<compile_context>
chip_gen: v7x
topology: tpu7x:2x2x1
jax: 0.10.0
libtpu: 0.0.40
codegen_flags: <defaults>
</compile_context>

<pallas_src>
import jax
import jax.numpy as jnp
from jax.experimental import pallas as pl
from jax.experimental.pallas import tpu as pltpu


_XLA_FASTPATH_BYTES = 128 * 1024  # below this, pallas_call overhead dominates


def time_attention_kernel(x_ref, wt_ref, b_ref, o_ref):
    """One batch tile of TimeAttention on lane-packed inputs.

    x_ref : (TB, S, FP)  lane-packed input (FP = P*F, P batches per 128-lane group)
    wt_ref: (FP, FP)     block-diagonal W^T (P copies), VMEM-resident
    b_ref : (1, FP)      packed bias (f32), VMEM-resident
    o_ref : (TB, FP)     lane/sublane-dense output tile
    """
    tb, s, fp = x_ref.shape
    x = x_ref[...]
    xf = x.astype(jnp.float32)                       # no-op for f32 inputs

    # Linear as ONE lane-dense MXU matmul per tile: (TB*S, FP) @ (FP, FP).
    # S == 8 -> each batch-group fills whole (8,128) tiles; the reshape is free.
    scores = jnp.dot(x.reshape(tb * s, fp), wt_ref[...],
                     preferred_element_type=jnp.float32) + b_ref[...]
    scores = scores.reshape(tb, s, fp)

    # Softmax over the sequence axis (axis 1), fused with the weighted sum.
    # Statistics in f32; the normalize is deferred to the small (TB, FP) slab.
    m = jnp.max(scores, axis=1, keepdims=True)       # (TB, 1, FP)
    e = jnp.exp(scores - m)                          # (TB, S, FP)
    denom = jnp.sum(e, axis=1)                       # (TB, FP)
    num = jnp.sum(e * xf, axis=1)                    # (TB, FP)

    # Exact reciprocal (EUP slot; kernel is HBM-bound so this is free) -> softmax
    # weights sum to exactly 1 (addresses the perf-review correctness note).
    o_ref[...] = (num * pl.reciprocal(denom, approx=False)).astype(o_ref.dtype)


def _vmem_plan():
    """Per-generation (tile_budget_bytes, scoped_vmem_limit_bytes)."""
    try:
        kind = jax.devices()[0].device_kind.lower()
    except Exception:
        kind = ""
    try:
        cap = int(pltpu.get_tpu_info().vmem_capacity_bytes)
    except Exception:
        cap = None
    if "v7" in kind:                       # v7x: 64 MiB VMEM per TensorCore
        return 24 << 20, 32 << 20
    if (cap is not None and cap >= (128 << 20)) or ("v5" in kind or "v6" in kind):
        return 48 << 20, 64 << 20          # v5e / v6e: 128 MiB physical VMEM
    return 24 << 20, 32 << 20              # unknown chip: conservative (v7x-safe)


def _plan_grid(n_groups, S, FP, x_itemsize, budget_bytes, x_buffers):
    """Pick (groups_per_tile, grid_steps) for the packed (n_groups, S, FP) input."""
    # VMEM per packed batch-group, counting the in-kernel intermediates:
    #   pipelined x tiles + scores/e/(e*x) f32 slabs + double-buffered output rows.
    per_group = (x_buffers * S * FP * x_itemsize
                 + 3 * S * FP * 4
                 + 2 * FP * 4)
    tb_cap = max(8, (budget_bytes // per_group) // 8 * 8)

    if n_groups < 16:
        # Too small to split into two sublane-aligned tiles; single grid step.
        # (Inputs this small normally take the XLA fast path anyway.)
        return n_groups, 1

    # >= 2 grid steps so both v7x TensorCores get work and input DMAs pipeline;
    # up to 8 steps as long as tiles keep >= ~512 rows (~85% of HBM roofline).
    target_steps = min(8, max(2, (n_groups * S) // 512))
    tb = pl.cdiv(n_groups, target_steps)
    tb = ((tb + 7) // 8) * 8               # sublane-aligned output blocks (dim % 8)
    tb = min(tb, tb_cap)
    steps = pl.cdiv(n_groups, tb)
    if steps % 2:
        steps += 1                         # even grid for 2-TensorCore balance (v7x)
    return tb, steps


def _x_block_spec(shape, index_map, buffers):
    """x input spec; buffers > 2 requests a deeper pipeline (pl.Buffered)."""
    if buffers is not None and buffers > 2:
        try:
            return pl.BlockSpec(shape, index_map, pipeline_mode=pl.Buffered(buffers))
        except TypeError:
            pass  # Pallas version without pipeline_mode: default double-buffering
    return pl.BlockSpec(shape, index_map)


def time_attention_ref(x, weight, bias):
    """Pure-JAX reference (f32 math) matching PyTorch TimeAttention on (B, S, F)."""
    xf = x.astype(jnp.float32)
    scores = jnp.einsum("bsf,of->bso", xf, weight.astype(jnp.float32))
    scores = scores + bias.astype(jnp.float32)
    w = jax.nn.softmax(scores, axis=1)
    return jnp.sum(w * xf, axis=1, keepdims=True)


def time_attention(x, weight, bias, *, force=None, x_buffers=2):
    """TimeAttention forward: x (B, S, F), weight (F, F) [out x in], bias (F,).

    Returns (B, 1, F).  force: None (auto), "pallas", or "xla".
    x_buffers: input pipeline depth; pass 3 (-> pl.Buffered(3)) if a bundle dump
    shows exposed DMA waits after lane packing shrank the per-tile compute.
    """
    B, S, F = x.shape
    # Tiny inputs: fixed pallas_call / per-step overhead dominates -> XLA path.
    if force != "pallas" and (
            force == "xla" or x.size * x.dtype.itemsize < _XLA_FASTPATH_BYTES):
        return time_attention_ref(x, weight, bias).astype(x.dtype)

    # Lane-packing factor: P batches per 128-lane group (P = 4 for F = 32).
    P = 128 // F if (F < 128 and 128 % F == 0) else 1
    FP = P * F

    budget, vmem_limit = _vmem_plan()
    n_groups = pl.cdiv(B, P)
    tb, steps = _plan_grid(n_groups, S, FP, x.dtype.itemsize, budget, x_buffers)
    Gp = tb * steps                        # padded group count (grid divides evenly)
    Bp = Gp * P                            # padded batch

    # One-time pre-pack: interleave P batches along the lane axis -> (Gp, S, P*F).
    # (In production the Conv1d producer would emit this layout directly.)
    xp = x if Bp == B else jnp.pad(x, ((0, Bp - B), (0, 0), (0, 0)))
    xp = xp.reshape(Gp, P, S, F).transpose(0, 2, 1, 3).reshape(Gp, S, FP)

    # Block-diagonal W^T (P copies): the Linear stays ONE matmul with K = N = FP,
    # and the off-diagonal padding is explicit zeros (no undefined lanes -> exp).
    wt = weight.T.astype(x.dtype)
    wtp = jnp.kron(jnp.eye(P, dtype=x.dtype), wt) if P > 1 else wt
    bp = jnp.tile(bias.astype(jnp.float32).reshape(1, F), (1, P))

    out_packed = pl.pallas_call(
        time_attention_kernel,
        out_shape=jax.ShapeDtypeStruct((Gp, FP), x.dtype),
        grid_spec=pltpu.PrefetchScalarGridSpec(
            num_scalar_prefetch=0,
            grid=(steps,),
            in_specs=[
                _x_block_spec((tb, S, FP), lambda i: (i, 0, 0), x_buffers),
                # weight / bias: constant index maps -> fetched once, VMEM-resident
                pl.BlockSpec((FP, FP), lambda i: (0, 0)),
                pl.BlockSpec((1, FP), lambda i: (0, 0)),
            ],
            out_specs=pl.BlockSpec((tb, FP), lambda i: (i, 0)),
        ),
        compiler_params=pltpu.CompilerParams(
            dimension_semantics=("parallel",),
            vmem_limit_bytes=vmem_limit,
        ),
    )(xp, wtp, bp)

    # Unpack: lane group p of packed row g is batch g*P + p.
    return out_packed.reshape(Bp, F)[:B].reshape(B, 1, F)


def timeseries_nn_forward(x, conv_w, conv_b, attn_w, attn_b, out_w, out_b):
    """Full TimeSeriesNeuralNetwork forward at the spec dims (plain XLA).

    x: (B, L, input_dim) with L == kernel_size, so the Conv1d output length is 1 and
    the module's `.squeeze(2)` / `Linear(1, output_dim)` type-check.
    """
    # TODO(synk): at the spec dims (num_kernels=2 features) a standalone Pallas call
    # is pure launch overhead (perf-review tiny-workload guidance), so the Conv1d
    # front-end / 2-feature attention / Linear(1, output_dim) stay on the XLA path;
    # the Pallas kernel above covers the TimeAttention block at production widths.
    feats = jnp.einsum("blc,ocl->bo", x, conv_w) + conv_b        # KernelFilter (B, K)
    scores = feats @ attn_w.T + attn_b                           # TimeAttention
    w = jax.nn.softmax(scores, axis=1)
    att = jnp.sum(w * feats, axis=1, keepdims=True)              # (B, 1)
    return att @ out_w.T + out_b                                  # (B, output_dim)


if __name__ == "__main__":
    key = jax.random.PRNGKey(0)
    (kx, kw, kb, kx2, kx3,
     kxt, kcw, kcb, kaw, kab, kow, kob) = jax.random.split(key, 12)

    # TimeAttention block shapes exercised by the kernel.
    S, F = 8, 32
    bound = 1.0 / float(F) ** 0.5
    weight = jax.random.uniform(kw, (F, F), minval=-bound, maxval=bound,
                                dtype=jnp.float32)
    bias = jax.random.uniform(kb, (F,), minval=-bound, maxval=bound,
                              dtype=jnp.float32)

    # 1) Tiny batch (module-like demo): auto-dispatch takes the XLA fast path.
    x_small = jax.random.normal(kx, (2, S, F), dtype=jnp.float32)
    out_small = jax.block_until_ready(time_attention(x_small, weight, bias))
    ref_small = time_attention_ref(x_small, weight, bias)
    assert out_small.shape == (2, 1, F)
    assert jnp.allclose(out_small, ref_small, atol=5e-3, rtol=5e-3)

    # 2) Same tiny batch forced through the Pallas kernel (pack + pad path).
    out_forced = jax.block_until_ready(
        time_attention(x_small, weight, bias, force="pallas"))
    assert out_forced.shape == (2, 1, F)
    assert jnp.allclose(out_forced, ref_small, atol=5e-3, rtol=5e-3)

    # 3) Batch large enough for the packed, even, multi-step grid (f32).
    B = 256
    x_big = jax.random.normal(kx2, (B, S, F), dtype=jnp.float32)
    out_big = jax.block_until_ready(time_attention(x_big, weight, bias))
    ref_big = time_attention_ref(x_big, weight, bias)
    assert out_big.shape == (B, 1, F)
    assert jnp.allclose(out_big, ref_big, atol=5e-3, rtol=5e-3)

    # 4) bf16 inputs (halved HBM traffic); matmul / softmax statistics stay f32.
    B2 = 512
    x_bf16 = jax.random.normal(kx3, (B2, S, F), dtype=jnp.float32).astype(jnp.bfloat16)
    out_bf16 = jax.block_until_ready(time_attention(x_bf16, weight, bias))
    ref_bf16 = time_attention_ref(
        x_bf16, weight.astype(jnp.bfloat16).astype(jnp.float32), bias)
    assert out_bf16.shape == (B2, 1, F)
    assert jnp.allclose(out_bf16.astype(jnp.float32), ref_bf16,
                        atol=1.5e-2, rtol=1.5e-2)

    # 5) Full TimeSeriesNeuralNetwork forward at the spec dims (XLA path).
    input_dim, kernel_size, num_kernels, output_dim = 5, 2, 2, 1
    x_ts = jax.random.normal(kxt, (2, kernel_size, input_dim), dtype=jnp.float32)
    conv_w = jax.random.normal(kcw, (num_kernels, input_dim, kernel_size),
                               dtype=jnp.float32) * 0.3
    conv_b = jax.random.normal(kcb, (num_kernels,), dtype=jnp.float32) * 0.1
    attn_w = jax.random.normal(kaw, (num_kernels, num_kernels), dtype=jnp.float32) * 0.5
    attn_b = jax.random.normal(kab, (num_kernels,), dtype=jnp.float32) * 0.1
    out_w = jax.random.normal(kow, (output_dim, 1), dtype=jnp.float32)
    out_b = jax.random.normal(kob, (output_dim,), dtype=jnp.float32) * 0.1
    y = jax.block_until_ready(
        timeseries_nn_forward(x_ts, conv_w, conv_b, attn_w, attn_b, out_w, out_b))
    assert y.shape == (2, output_dim)
    assert bool(jnp.all(jnp.isfinite(y)))

    print("KERNEL_OK")
</pallas_src>

<mosaic_0001>
module attributes {stable_mosaic.version = 11 : i64} {
  func.func @time_attention_kernel(%arg0: i32, %arg1: memref<1x8x128xf32, #tpu.memory_space<vmem>>, %arg2: memref<128x128xf32, #tpu.memory_space<vmem>>, %arg3: memref<1x128xf32, #tpu.memory_space<vmem>>, %arg4: memref<1x128xf32, #tpu.memory_space<vmem>>) attributes {dimension_semantics = [#tpu.dimension_semantics<parallel>], iteration_bounds = array<i64: 1>, scalar_prefetch = 0 : i64, scratch_operands = 0 : i64, tpu.core_type = #tpu.core_type<tc>, window_params = [{transform_indices = @transform_0, window_bounds = array<i64: 1, 8, 128>}, {pipeline_mode = #tpu.pipeline_mode<synchronous>, transform_indices = @transform_1, window_bounds = array<i64: 128, 128>}, {pipeline_mode = #tpu.pipeline_mode<synchronous>, transform_indices = @transform_2, window_bounds = array<i64: 1, 128>}, {transform_indices = @transform_3, window_bounds = array<i64: 1, 128>}]} {
    %c0 = arith.constant 0 : index
    %c0_0 = arith.constant 0 : index
    %c0_1 = arith.constant 0 : index
    %0 = vector.load %arg1[%c0, %c0_0, %c0_1] : memref<1x8x128xf32, #tpu.memory_space<vmem>>, vector<1x8x128xf32>
    %1 = vector.shape_cast %0 : vector<1x8x128xf32> to vector<8x128xf32>
    %c0_2 = arith.constant 0 : index
    %c0_3 = arith.constant 0 : index
    %2 = vector.load %arg2[%c0_2, %c0_3] : memref<128x128xf32, #tpu.memory_space<vmem>>, vector<128x128xf32>
    %cst = arith.constant dense<0.000000e+00> : vector<8x128xf32>
    %3 = tpu.matmul %1, %2, %cst {dimension_numbers = #tpu.dot_dimension_numbers<[1], [0], [0], [1], [0, 0, 1, 1], [], []>} : vector<8x128xf32>, vector<128x128xf32>, vector<8x128xf32> -> vector<8x128xf32>
    %c0_4 = arith.constant 0 : index
    %c0_5 = arith.constant 0 : index
    %4 = vector.load %arg3[%c0_4, %c0_5] : memref<1x128xf32, #tpu.memory_space<vmem>>, vector<1x128xf32>
    %5 = vector.broadcast %4 : vector<1x128xf32> to vector<8x128xf32>
    %6 = arith.addf %3, %5 : vector<8x128xf32>
    %7 = vector.shape_cast %6 : vector<8x128xf32> to vector<1x8x128xf32>
    %cst_6 = arith.constant dense<0xFF800000> : vector<1x128xf32>
    %8 = vector.multi_reduction <maximumf>, %7, %cst_6 [1] : vector<1x8x128xf32> to vector<1x128xf32>
    %9 = vector.shape_cast %8 : vector<1x128xf32> to vector<1x1x128xf32>
    %10 = vector.broadcast %9 : vector<1x1x128xf32> to vector<1x8x128xf32>
    %11 = arith.subf %7, %10 : vector<1x8x128xf32>
    %12 = math.exp %11 : vector<1x8x128xf32>
    %cst_7 = arith.constant dense<0.000000e+00> : vector<1x128xf32>
    %13 = vector.multi_reduction <add>, %12, %cst_7 [1] : vector<1x8x128xf32> to vector<1x128xf32>
    %14 = arith.mulf %12, %0 : vector<1x8x128xf32>
    %cst_8 = arith.constant dense<0.000000e+00> : vector<1x128xf32>
    %15 = vector.multi_reduction <add>, %14, %cst_8 [1] : vector<1x8x128xf32> to vector<1x128xf32>
    %16 = tpu.reciprocal %13 : vector<1x128xf32> -> vector<1x128xf32>
    %17 = arith.mulf %15, %16 : vector<1x128xf32>
    %c0_9 = arith.constant 0 : index
    %c0_10 = arith.constant 0 : index
    %18 = vector.load %arg4[%c0_9, %c0_10] : memref<1x128xf32, #tpu.memory_space<vmem>>, vector<1x128xf32>
    tpu.vector_store %arg4[%c0_9, %c0_10], %17 {strides = array<i32>} : memref<1x128xf32, #tpu.memory_space<vmem>>, vector<1x128xf32>,
    return
  }
  func.func @transform_0(%arg0: i32) -> (i32, i32, i32) {
    %c0_i32 = arith.constant 0 : i32
    %c0_i32_0 = arith.constant 0 : i32
    %c0_i32_1 = arith.constant 0 : i32
    return %arg0, %c0_i32, %c0_i32_0 : i32, i32, i32
  }
  func.func @transform_1(%arg0: i32) -> (i32, i32) {
    %c0_i32 = arith.constant 0 : i32
    %c0_i32_0 = arith.constant 0 : i32
    %c0_i32_1 = arith.constant 0 : i32
    return %c0_i32, %c0_i32_0 : i32, i32
  }
  func.func @transform_2(%arg0: i32) -> (i32, i32) {
    %c0_i32 = arith.constant 0 : i32
    %c0_i32_0 = arith.constant 0 : i32
    %c0_i32_1 = arith.constant 0 : i32
    return %c0_i32, %c0_i32_0 : i32, i32
  }
  func.func @transform_3(%arg0: i32) -> (i32, i32) {
    %c0_i32 = arith.constant 0 : i32
    %c0_i32_0 = arith.constant 0 : i32
    return %arg0, %c0_i32 : i32, i32
  }
}

</mosaic_0001>

<bundles_post_ra>
// kernel: tpu_custom_call.1
= control target key start
LH: loop header
LB: loop body
LE: loop exit
PB: predicated region body
PF: predicated region fallthrough
CT: control target
= control target key end

     0   :  { %8 = vsyncpa [#allocation3], 0  ;;  %s411_s0 = inlined_call_operand.hbm [shape: f32[1,8,128], index: 0, kind: input, shape index: {}]   ;;  %s412_s1 = inlined_call_operand.hbm [shape: f32[128,128], index: 1, kind: input, shape index: {}]   ;;  %s413_s2 = inlined_call_operand.vmem [shape: f32[1,128], index: 2, kind: input, shape index: {}]   ;;  %s414_s3 = inlined_call_operand.hbm [shape: f32[1,128], index: 3, kind: output, shape index: {}]  }
   0x1   :  { %9 = vsyncpa [#allocation6], 0 }
   0x2   :  { %10 = vsyncpa [#allocation4], 0  ;;  %s337_s12 = smov [#allocation2]   ;;  %s338_s14 = smov [#allocation5]  }
   0x3   :  { %s17_s13 = sshll.u32 %s337_s12, 4  ;;  %s26_s15 = sshll.u32 %s338_s14, 4  ;;  %s18_s13 = int_to_ptr.vmem [resolvable:$true] %s17_s13  ;;  %s365_s15 = int_to_ptr.vmem [resolvable:$true] %s26_s15 }
   0x4   :  { %s265_s18 = scalar_lea.hbm %s411_s0, 128 }
   0x5   :  { %p266_p0 = scmp.ne.s32.totalorder %s411_s0, %s265_s18  ;;  %p269_p1 = scmp.lt.u32.totalorder %s265_s18, %s411_s0 }
   0x7   :  { %p271_p2 = pnand %p269_p1, %p266_p0 }
   0x9   :  { %274 = shalt.err (!%p271_p2)
}
   0xa   :  { %s275_s23 = scalar_lea.vmem %s18_s13, 128  ;;  %p280_p4 = scmp.lt.s32.totalorder %s18_s13, %s18_s13 }
   0xb   :  { %p276_p3 = scmp.ne.s32.totalorder %s18_s13, %s275_s23  ;;  %p281_p5 = scmp.lt.s32.totalorder %s275_s23, %s275_s23 }
   0xd   :  { %p282_p6 = por %p281_p5, %p280_p4 }
   0xf   :  { %p283_p7 = pnand %p282_p6, %p276_p3 }
  0x11   :  { %286 = shalt.err (!%p283_p7)
}
  0x12   :  { %20 = dma.hbm_to_vmem [thread:$0]  %s411_s0, 128, %s18_s13, [#allocation3]  }
  0x13   :  { %s287_s28 = scalar_lea.hbm %s412_s1, 2048 }
  0x14   :  { %p288_p8 = scmp.ne.s32.totalorder %s412_s1, %s287_s28  ;;  %p291_p9 = scmp.lt.u32.totalorder %s287_s28, %s412_s1 }
  0x16   :  { %p293_p10 = pnand %p291_p9, %p288_p8 }
  0x18   :  { %296 = shalt.err (!%p293_p10)
}
  0x19   :  { %s297_s6 = scalar_lea.vmem %s365_s15, 2048  ;;  %p302_p12 = scmp.lt.s32.totalorder %s365_s15, %s365_s15 }
  0x1a   :  { %p298_p11 = scmp.ne.s32.totalorder %s365_s15, %s297_s6  ;;  %p303_p13 = scmp.lt.s32.totalorder %s297_s6, %s297_s6 }
  0x1c   :  { %p304_p0 = por %p303_p13, %p302_p12 }
  0x1e   :  { %p305_p1 = pnand %p304_p0, %p298_p11 }
  0x20   :  { %308 = shalt.err (!%p305_p1)
}
  0x21   :  { %s339_s0 = smov 128   ;;  %s340_s7 = smov 8  }
  0x22   :  { %32 = dma.hbm_to_vmem [thread:$0]  %s412_s1, 2048, %s365_s15, [#allocation6], %s339_s0, %s339_s0, %s340_s7  }
  0x23   :  { %331 = dma.done.wait [#allocation3], 128  }
  0x24   :  { %332 = vsyncadd [#allocation3], 4294967168 }
  0x25   :  { %333 = dma.done.wait [#allocation6], 2048  }
  0x26   :  { %334 = vsyncadd [#allocation6], 4294965248  ;;  %v341_v0 = vmov 0.0|0.0   ;;  %vm342_vm0 = vmmov 0   ;;  %v343_v1 = vmov 0.0   ;;  %v42_v2 = vld [vmem:[#allocation5] sm:$0xff] }
  0x27   :  { %229 = vmatprep.subr.bf16.mxu0 %v341_v0  ;;  %226 = vmatprep.mubr.msk.f32.mxu0 %vm342_vm0, %v343_v1  ;;  %v43_v3 = vld [vmem:[#allocation5 + $0x8] sm:$0xff]  ;;  %v44_v4 = vld [vmem:[#allocation5 + $0x10] sm:$0xff]  ;;  %v45_v6 = vld [vmem:[#allocation5 + $0x18] sm:$0xff] }
  0x28   :  { %v230_v5 = vpack.c.bf16 %v43_v3, %v42_v2  ;;  %v233_v7 = vpack.c.bf16 %v45_v6, %v44_v4  ;;  %v46_v8 = vld [vmem:[#allocation5 + $0x20] sm:$0xff]  ;;  %v47_v9 = vld [vmem:[#allocation5 + $0x28] sm:$0xff]  ;;  %v48_v11 = vld [vmem:[#allocation5 + $0x30] sm:$0xff] }
  0x29   :  { %v236_v10 = vpack.c.bf16 %v47_v9, %v46_v8  ;;  %v49_v12 = vld [vmem:[#allocation5 + $0x38] sm:$0xff]  ;;  %v50_v14 = vld [vmem:[#allocation5 + $0x40] sm:$0xff]  ;;  %v51_v15 = vld [vmem:[#allocation5 + $0x48] sm:$0xff] }
  0x2a   :  { %231 = vmatpush3.bf16.msra.mxu0 %v230_v5  ;;  %v239_v13 = vpack.c.bf16 %v49_v12, %v48_v11  ;;  %v242_v16 = vpack.c.bf16 %v51_v15, %v50_v14  ;;  %v52_v17 = vld [vmem:[#allocation5 + $0x50] sm:$0xff]  ;;  %v53_v18 = vld [vmem:[#allocation5 + $0x58] sm:$0xff]  ;;  %v54_v20 = vld [vmem:[#allocation5 + $0x60] sm:$0xff] }
  0x2b   :  { %232 = vmatprep.subr.bf16.mxu0 %v341_v0  ;;  %v245_v19 = vpack.c.bf16 %v53_v18, %v52_v17  ;;  %v55_v21 = vld [vmem:[#allocation5 + $0x68] sm:$0xff]  ;;  %v56_v23 = vld [vmem:[#allocation5 + $0x70] sm:$0xff]  ;;  %v57_v24 = vld [vmem:[#allocation5 + $0x78] sm:$0xff] }
  0x2c   :  { %v248_v22 = vpack.c.bf16 %v55_v21, %v54_v20  ;;  %v251_v25 = vpack.c.bf16 %v57_v24, %v56_v23  ;;  %v41_v26 = vld [vmem:[#allocation2] sm:$0xff] }
  0x2d   :  { %v176_v27 = vld [vmem:[%s413_s2] ss:$0 sm:$0xff]  ;;  %s344_s2 = smov [#allocation7]  }
  0x2e   :  { %234 = vmatpush3.bf16.msra.mxu0 %v233_v7  ;;  %s166_s11 = sshll.u32 %s344_s2, 4  ;;  %s167_s11 = int_to_ptr.vmem [resolvable:$true] %s166_s11 }
  0x2f   :  { %235 = vmatprep.subr.bf16.mxu0 %v341_v0  ;;  %s309_s12 = scalar_lea.vmem %s167_s11, 16  ;;  %s313_s13 = scalar_lea.vmem %s167_s11, 32 }
  0x30   :  { %p310_p2 = scmp.ne.s32.totalorder %s167_s11, %s309_s12  ;;  %p314_p3 = scmp.lt.s32.totalorder %s167_s11, %s167_s11 }
  0x31   :  { %p315_p4 = scmp.lt.s32.totalorder %s313_s13, %s309_s12 }
  0x32   :  { %237 = vmatpush3.bf16.msra.mxu0 %v236_v10 }
  0x33   :  { %238 = vmatprep.subr.bf16.mxu0 %v341_v0  ;;  %p316_p5 = por %p315_p4, %p314_p3 }
  0x35   :  { %p317_p6 = pnand %p316_p5, %p310_p2 }
  0x36   :  { %240 = vmatpush3.bf16.msra.mxu0 %v239_v13 }
  0x37   :  { %241 = vmatprep.subr.bf16.mxu0 %v341_v0 }
  0x3a   :  { %243 = vmatpush3.bf16.msra.mxu0 %v242_v16 }
  0x3b   :  { %244 = vmatprep.subr.bf16.mxu0 %v341_v0 }
  0x3e   :  { %246 = vmatpush3.bf16.msra.mxu0 %v245_v19 }
  0x3f   :  { %247 = vmatprep.subr.bf16.mxu0 %v341_v0 }
  0x42   :  { %249 = vmatpush3.bf16.msra.mxu0 %v248_v22 }
  0x43   :  { %250 = vmatprep.subr.bf16.mxu0 %v341_v0 }
  0x46   :  { %252 = vmatpush3.bf16.msra.mxu0 %v251_v25 }
  0x49   :  { %227 = vmatmul.mubr.f32.vlgmr.msra.gmra.mrb[0].mxu0 %v41_v26 }
 0x11c   :  { %v131_v28 = vpop.f32.mrb[0].mxu0 }
 0x11d   :  { %v132_v29 = vadd.f32 %v176_v27, %v131_v28  ;;  %v228_v30 = vpop.f32.mrb[1].mxu0 }
 0x11f   :  { %v135_v31 = vrot.slane %v132_v29, 4 }
 0x121   :  { %v136_v32 = vmax.f32 %v132_v29, %v135_v31 }
 0x123   :  { %v137_v33 = vrot.slane %v136_v32, 2 }
 0x125   :  { %v138_v34 = vmax.f32 %v136_v32, %v137_v33 }
 0x127   :  { %v139_v35 = vrot.slane %v138_v34, 1 }
 0x129   :  { %v140_v36 = vmax.f32 %v138_v34, %v139_v35 }
 0x12b   :  { %v141_v37 = vsub.f32 %v132_v29, %v140_v36 }
 0x12d   :  { %v142_v38 = vmul.f32 1.442695, %v141_v37 }
 0x12f   :  { %261 = vpow2.f32 %v142_v38 }
 0x139   :  { %v262_v39 = vpop.eup %261 }
 0x13a   :  { %v144_v40 = vrot.slane %v262_v39, 4  ;;  %v150_v41 = vmul.f32 %v262_v39, %v41_v26 }
 0x13c   :  { %v145_v42 = vadd.f32 %v262_v39, %v144_v40  ;;  %v151_v43 = vrot.slane %v150_v41, 4 }
 0x13e   :  { %v146_v44 = vrot.slane %v145_v42, 2  ;;  %v152_v45 = vadd.f32 %v151_v43, %v150_v41 }
 0x140   :  { %v147_v46 = vadd.f32 %v146_v44, %v145_v42  ;;  %v153_v48 = vrot.slane %v152_v45, 2 }
 0x142   :  { %v148_v47 = vrot.slane %v147_v46, 1  ;;  %v154_v50 = vadd.f32 %v153_v48, %v152_v45 }
 0x144   :  { %v149_v49 = vadd.f32 %v148_v47, %v147_v46  ;;  %v155_v51 = vrot.slane %v154_v50, 1 }
 0x146   :  { %263 = vrcp.f32 %v149_v49  ;;  %v156_v52 = vadd.f32 %v155_v51, %v154_v50 }
 0x150   :  { %v264_v53 = vpop.eup %263 }
 0x151   :  { %v158_v54 = vmul.f32 %v264_v53, %v156_v52 }
 0x153   :  { %159 = vst [vmem:[#allocation7] sm:$0x1] %v158_v54 }
 0x154   :  { %320 = shalt.err (!%p317_p6)
}
 0x155   :  { %s321_s16 = scalar_lea.hbm %s414_s3, 16 }
 0x156   :  { %p322_p7 = scmp.ne.s32.totalorder %s414_s3, %s321_s16  ;;  %p325_p8 = scmp.lt.u32.totalorder %s321_s16, %s414_s3 }
 0x158   :  { %p327_p9 = pnand %p325_p8, %p322_p7 }
 0x15a   :  { %330 = shalt.err (!%p327_p9)
}
 0x15b   :  { %169 = dma.vmem_to_hbm [thread:$0]  %s167_s11, 16, %s414_s3, [#allocation4]  }
 0x15c   :  { %335 = dma.done.wait [#allocation4], 16  }
 0x15d   :  { %336 = vsyncadd [#allocation4], 4294967280 }
 0x15e   :  { %173 = vsyncpa [#allocation3], 1 }
 0x15f   :  { %174 = vsyncpa [#allocation6], 1 }
 0x160   :  { %175 = vsyncpa [#allocation4], 1 }

</bundles_post_ra>
